<compile_context>
chip_gen: v7x
topology: tpu7x:2x2x1
jax: 0.10.0
libtpu: 0.0.40
codegen_flags: <defaults>
</compile_context>

<pallas_src>
import jax
import jax.numpy as jnp
from jax import lax
from jax.experimental import pallas as pl
from jax.experimental.pallas import tpu as pltpu

_LANE = 128
_MIN_TILE = 8


def _one_hot(idx_ref, num_categories, dtype):
    ids = idx_ref[...]                                             # (TM, 1) int32
    tm = ids.shape[0]
    cats = lax.broadcasted_iota(jnp.int32, (tm, num_categories), 1)  # (TM, C)
    return (cats == ids).astype(dtype)                             # exact 0/1


def _embed_kernel(idx_ref, table_ref, out_ref):
    # Pure gather: one_hot (TM, C) @ table (C, Dp).  HIGHEST precision => exact f32 rows.
    oh = _one_hot(idx_ref, table_ref.shape[0], table_ref.dtype)
    out_ref[...] = jnp.dot(
        oh, table_ref[...],
        preferred_element_type=jnp.float32,
        precision=lax.Precision.HIGHEST,
    ).astype(out_ref.dtype)


def _embed_project_kernel(idx_ref, table_ref, w_ref, b_ref, out_ref):
    # Gather + fused projection: (one_hot @ table) @ W + b, all on-chip per token tile.
    oh = _one_hot(idx_ref, table_ref.shape[0], table_ref.dtype)
    emb = jnp.dot(oh, table_ref[...],
                  preferred_element_type=jnp.float32,
                  precision=lax.Precision.HIGHEST)                 # (TM, E) exact rows
    out_ref[...] = (
        jnp.dot(emb, w_ref[...],
                preferred_element_type=jnp.float32,
                precision=lax.Precision.HIGHEST)
        + b_ref[...]
    ).astype(out_ref.dtype)


def categorical_embedding(x, emb_table, w_t=None, bias=None, *, token_tile=1024):
    """Pallas equivalent of CategoricalEmbedding.forward.

    x:         int array of category indices, arbitrary shape
    emb_table: (C, E) float32 embedding table
    w_t:       optional (E, O) float32 (transposed torch nn.Linear weight)
    bias:      optional (O,) float32
    """
    orig_shape = x.shape
    C, E = emb_table.shape

    # torch nn.Embedding raises on OOB indices; we clamp deterministically instead.
    idx = jnp.clip(x.reshape(-1).astype(jnp.int32), 0, C - 1)
    n = idx.shape[0]

    project = w_t is not None
    D = w_t.shape[1] if project else E
    # Lane-dense output width (multiple of 128) -> unmasked vector stores.
    Dp = _LANE * pl.cdiv(max(D, 1), _LANE)

    # --- token tiling --------------------------------------------------------
    tm = max(_MIN_TILE, min(int(token_tile), pl.next_power_of_2(max(n, 1))))
    # If one tile covers everything but it is large, split so both v7x TCs get work
    # (on 1-TC chips this only adds one ~0.35us grid step).
    if pl.cdiv(n, tm) == 1 and tm >= 512:
        tm //= 2
    n_pad = tm * pl.cdiv(n, tm)
    grid = (n_pad // tm,)
    idx_p = jnp.pad(idx, (0, n_pad - n)).reshape(n_pad, 1)

    resident = pl.Buffered(1)  # constant-index blocks: no double buffering

    if project:
        O = D
        b = jnp.zeros((O,), emb_table.dtype) if bias is None else bias.astype(emb_table.dtype)
        # Pad W / bias columns up to the lane-dense output width (zeros -> sliced off later).
        w_p = jnp.pad(w_t.astype(emb_table.dtype), ((0, 0), (0, Dp - O)))
        b_p = jnp.pad(b, (0, Dp - O)).reshape(1, Dp)
        kernel = _embed_project_kernel
        operands = (idx_p, emb_table, w_p, b_p)
        in_specs = [
            pl.BlockSpec((tm, 1), lambda i: (i, 0)),
            pl.BlockSpec((C, E), lambda i: (0, 0), pipeline_mode=resident),
            pl.BlockSpec((E, Dp), lambda i: (0, 0), pipeline_mode=resident),
            pl.BlockSpec((1, Dp), lambda i: (0, 0), pipeline_mode=resident),
        ]
        resident_bytes = (C * E + E * Dp + Dp) * 4
    else:
        # Embedding-only: pad table columns so the output block is lane-dense.
        table_p = jnp.pad(emb_table, ((0, 0), (0, Dp - E)))
        kernel = _embed_kernel
        operands = (idx_p, table_p)
        in_specs = [
            pl.BlockSpec((tm, 1), lambda i: (i, 0)),
            pl.BlockSpec((C, Dp), lambda i: (0, 0), pipeline_mode=resident),
        ]
        resident_bytes = C * Dp * 4

    # Scoped-VMEM budget: resident weights + double-buffered idx/out tiles + one-hot /
    # intermediate vregs, with 2x headroom; capped at v7x physical VMEM (64 MiB).
    work_bytes = (2 * tm * Dp + 2 * tm * _LANE + tm * C + tm * max(E, Dp)) * 4
    vmem_limit = int(min(max(2 * (resident_bytes + work_bytes), 16 << 20), 64 << 20))

    out = pl.pallas_call(
        kernel,
        out_shape=jax.ShapeDtypeStruct((n_pad, Dp), emb_table.dtype),
        grid=grid,
        in_specs=in_specs,
        out_specs=pl.BlockSpec((tm, Dp), lambda i: (i, 0)),
        compiler_params=pltpu.CompilerParams(
            dimension_semantics=("parallel",),     # independent token tiles -> 2-TC split on v7x
            vmem_limit_bytes=vmem_limit,
        ),
    )(*operands)

    return out[:n, :D].reshape(*orig_shape, D)


def _xavier_uniform(key, fan_in, fan_out, shape):
    bound = (6.0 / (fan_in + fan_out)) ** 0.5
    return jax.random.uniform(key, shape, jnp.float32, -bound, bound)


if __name__ == "__main__":
    # Module config (synthetic, deterministic init).
    num_categories = 32
    embedding_dim = 64
    output_dim = 128          # != embedding_dim -> projection is active

    batch, seq = 2, 8

    key = jax.random.PRNGKey(0)
    k_emb, k_w, k_x = jax.random.split(key, 3)

    # nn.Embedding weight (xavier_uniform, as in _init_weights)
    emb_table = _xavier_uniform(k_emb, num_categories, embedding_dim,
                                (num_categories, embedding_dim))
    # nn.Linear(embedding_dim, output_dim): torch weight is (O, E); keep transposed (E, O)
    w_t = _xavier_uniform(k_w, embedding_dim, output_dim,
                          (embedding_dim, output_dim))
    bias = jnp.zeros((output_dim,), jnp.float32)

    # Input: category indices, shape (batch, seq)
    x = jax.random.randint(k_x, (batch, seq), 0, num_categories, jnp.int32)

    # Projection path
    out = jax.block_until_ready(categorical_embedding(x, emb_table, w_t, bias))
    ref = jnp.dot(jnp.take(emb_table, x, axis=0), w_t,
                  precision=lax.Precision.HIGHEST) + bias
    assert out.shape == (batch, seq, output_dim), out.shape
    assert jnp.allclose(out, ref, atol=1e-5, rtol=1e-5), "projection path mismatch"

    # Embedding-only path (no projection) -- gathered rows must be (bit-)exact
    out2 = jax.block_until_ready(categorical_embedding(x, emb_table))
    ref2 = jnp.take(emb_table, x, axis=0)
    assert out2.shape == (batch, seq, embedding_dim), out2.shape
    assert jnp.allclose(out2, ref2, atol=1e-6), "embedding-only path mismatch"

    print("KERNEL_OK")
</pallas_src>

<mosaic_0001>
module attributes {stable_mosaic.version = 11 : i64} {
  func.func @_embed_project_kernel(%arg0: i32, %arg1: memref<16x1xi32, #tpu.memory_space<vmem>>, %arg2: memref<32x64xf32, #tpu.memory_space<vmem>>, %arg3: memref<64x128xf32, #tpu.memory_space<vmem>>, %arg4: memref<1x128xf32, #tpu.memory_space<vmem>>, %arg5: memref<16x128xf32, #tpu.memory_space<vmem>>) attributes {dimension_semantics = [#tpu.dimension_semantics<parallel>], iteration_bounds = array<i64: 1>, scalar_prefetch = 0 : i64, scratch_operands = 0 : i64, tpu.core_type = #tpu.core_type<tc>, window_params = [{transform_indices = @transform_0, window_bounds = array<i64: 16, 1>}, {pipeline_mode = #tpu.pipeline_mode<synchronous>, transform_indices = @transform_1, window_bounds = array<i64: 32, 64>}, {pipeline_mode = #tpu.pipeline_mode<synchronous>, transform_indices = @transform_2, window_bounds = array<i64: 64, 128>}, {pipeline_mode = #tpu.pipeline_mode<synchronous>, transform_indices = @transform_3, window_bounds = array<i64: 1, 128>}, {transform_indices = @transform_4, window_bounds = array<i64: 16, 128>}]} {
    %c0 = arith.constant 0 : index
    %c0_0 = arith.constant 0 : index
    %0 = vector.load %arg1[%c0, %c0_0] : memref<16x1xi32, #tpu.memory_space<vmem>>, vector<16x1xi32>
    %1 = tpu.iota {dimensions = array<i32: 1>} : vector<16x32xi32>
    %2 = vector.broadcast %0 : vector<16x1xi32> to vector<16x32xi32>
    %3 = arith.cmpi eq, %1, %2 : vector<16x32xi32>
    %4 = arith.extui %3 : vector<16x32xi1> to vector<16x32xi32>
    %5 = arith.sitofp %4 : vector<16x32xi32> to vector<16x32xf32>
    %c0_1 = arith.constant 0 : index
    %c0_2 = arith.constant 0 : index
    %6 = vector.load %arg2[%c0_1, %c0_2] : memref<32x64xf32, #tpu.memory_space<vmem>>, vector<32x64xf32>
    %cst = arith.constant dense<0.000000e+00> : vector<16x64xf32>
    %7 = tpu.matmul %5, %6, %cst {dimension_numbers = #tpu.dot_dimension_numbers<[1], [0], [0], [1], [0, 0, 1, 1], [], []>, precision = #tpu.contract_precision<fp32>} : vector<16x32xf32>, vector<32x64xf32>, vector<16x64xf32> -> vector<16x64xf32>
    %c0_3 = arith.constant 0 : index
    %c0_4 = arith.constant 0 : index
    %8 = vector.load %arg3[%c0_3, %c0_4] : memref<64x128xf32, #tpu.memory_space<vmem>>, vector<64x128xf32>
    %cst_5 = arith.constant dense<0.000000e+00> : vector<16x128xf32>
    %9 = tpu.matmul %7, %8, %cst_5 {dimension_numbers = #tpu.dot_dimension_numbers<[1], [0], [0], [1], [0, 0, 1, 1], [], []>, precision = #tpu.contract_precision<fp32>} : vector<16x64xf32>, vector<64x128xf32>, vector<16x128xf32> -> vector<16x128xf32>
    %c0_6 = arith.constant 0 : index
    %c0_7 = arith.constant 0 : index
    %10 = vector.load %arg4[%c0_6, %c0_7] : memref<1x128xf32, #tpu.memory_space<vmem>>, vector<1x128xf32>
    %11 = vector.broadcast %10 : vector<1x128xf32> to vector<16x128xf32>
    %12 = arith.addf %9, %11 : vector<16x128xf32>
    %c0_8 = arith.constant 0 : index
    %c0_9 = arith.constant 0 : index
    %13 = vector.load %arg5[%c0_8, %c0_9] : memref<16x128xf32, #tpu.memory_space<vmem>>, vector<16x128xf32>
    tpu.vector_store %arg5[%c0_8, %c0_9], %12 {strides = array<i32>} : memref<16x128xf32, #tpu.memory_space<vmem>>, vector<16x128xf32>,
    return
  }
  func.func @transform_0(%arg0: i32) -> (i32, i32) {
    %c0_i32 = arith.constant 0 : i32
    %c0_i32_0 = arith.constant 0 : i32
    return %arg0, %c0_i32 : i32, i32
  }
  func.func @transform_1(%arg0: i32) -> (i32, i32) {
    %c0_i32 = arith.constant 0 : i32
    %c0_i32_0 = arith.constant 0 : i32
    %c0_i32_1 = arith.constant 0 : i32
    return %c0_i32, %c0_i32_0 : i32, i32
  }
  func.func @transform_2(%arg0: i32) -> (i32, i32) {
    %c0_i32 = arith.constant 0 : i32
    %c0_i32_0 = arith.constant 0 : i32
    %c0_i32_1 = arith.constant 0 : i32
    return %c0_i32, %c0_i32_0 : i32, i32
  }
  func.func @transform_3(%arg0: i32) -> (i32, i32) {
    %c0_i32 = arith.constant 0 : i32
    %c0_i32_0 = arith.constant 0 : i32
    %c0_i32_1 = arith.constant 0 : i32
    return %c0_i32, %c0_i32_0 : i32, i32
  }
  func.func @transform_4(%arg0: i32) -> (i32, i32) {
    %c0_i32 = arith.constant 0 : i32
    %c0_i32_0 = arith.constant 0 : i32
    return %arg0, %c0_i32 : i32, i32
  }
}

</mosaic_0001>

<bundles_post_ra>
// kernel: tpu_custom_call.1
= control target key start
LH: loop header
LB: loop body
LE: loop exit
PB: predicated region body
PF: predicated region fallthrough
CT: control target
= control target key end

     0   :  { %9 = vsyncpa [#allocation3], 0  ;;  %s1974_s0 = inlined_call_operand.vmem [shape: s32[16,1], index: 0, kind: input, shape index: {}]   ;;  %s1975_s1 = inlined_call_operand.hbm [shape: f32[32,64], index: 1, kind: input, shape index: {}]   ;;  %s1976_s2 = inlined_call_operand.hbm [shape: f32[64,128], index: 2, kind: input, shape index: {}]   ;;  %s1977_s3 = inlined_call_operand.vmem [shape: f32[1,128], index: 3, kind: input, shape index: {}]   ;;  %s1978_s4 = inlined_call_operand.hbm [shape: f32[16,128], index: 4, kind: output, shape index: {}]  }
   0x1   :  { %10 = vsyncpa [#allocation6], 0 }
   0x2   :  { %11 = vsyncpa [#allocation4], 0  ;;  %s1754_s15 = smov [#allocation2]   ;;  %s1682_s19 = scalar_lea.hbm %s1975_s1, 512 }
   0x3   :  { %s19_s16 = sshll.u32 %s1754_s15, 4  ;;  %p1683_p0 = scmp.ne.s32.totalorder %s1975_s1, %s1682_s19  ;;  %s20_s16 = int_to_ptr.vmem [resolvable:$true] %s19_s16 }
   0x4   :  { %p1686_p1 = scmp.lt.u32.totalorder %s1682_s19, %s1975_s1 }
   0x6   :  { %p1688_p2 = pnand %p1686_p1, %p1683_p0 }
   0x8   :  { %1691 = shalt.err (!%p1688_p2)
}
   0x9   :  { %s1692_s24 = scalar_lea.vmem %s20_s16, 512  ;;  %p1697_p4 = scmp.lt.s32.totalorder %s20_s16, %s20_s16 }
   0xa   :  { %p1693_p3 = scmp.ne.s32.totalorder %s20_s16, %s1692_s24  ;;  %p1698_p5 = scmp.lt.s32.totalorder %s1692_s24, %s1692_s24 }
   0xc   :  { %p1699_p6 = por %p1698_p5, %p1697_p4 }
   0xe   :  { %p1700_p7 = pnand %p1699_p6, %p1693_p3 }
  0x10   :  { %1703 = shalt.err (!%p1700_p7)
}
  0x11   :  { %s1755_s25 = smov 128   ;;  %s1756_s26 = smov 8  }
  0x12   :  { %25 = dma.hbm_to_vmem [thread:$0]  %s1975_s1, 512, %s20_s16, [#allocation3], %s1755_s25, %s1755_s25, %s1756_s26  }
  0x13   :  { %s1757_s29 = smov [#allocation5]   ;;  %s1704_s7 = scalar_lea.hbm %s1976_s2, 1024 }
  0x14   :  { %s31_s30 = sshll.u32 %s1757_s29, 4  ;;  %p1705_p8 = scmp.ne.s32.totalorder %s1976_s2, %s1704_s7  ;;  %s32_s30 = int_to_ptr.vmem [resolvable:$true] %s31_s30 }
  0x15   :  { %p1708_p9 = scmp.lt.u32.totalorder %s1704_s7, %s1976_s2 }
  0x17   :  { %p1710_p10 = pnand %p1708_p9, %p1705_p8 }
  0x19   :  { %1713 = shalt.err (!%p1710_p10)
}
  0x1a   :  { %s1714_s12 = scalar_lea.vmem %s32_s30, 1024  ;;  %p1719_p12 = scmp.lt.s32.totalorder %s32_s30, %s32_s30 }
  0x1b   :  { %p1715_p11 = scmp.ne.s32.totalorder %s32_s30, %s1714_s12  ;;  %p1720_p13 = scmp.lt.s32.totalorder %s1714_s12, %s1714_s12 }
  0x1d   :  { %p1721_p0 = por %p1720_p13, %p1719_p12 }
  0x1f   :  { %p1722_p1 = pnand %p1721_p0, %p1715_p11 }
  0x21   :  { %1725 = shalt.err (!%p1722_p1)
}
  0x22   :  { %37 = dma.hbm_to_vmem [thread:$0]  %s1976_s2, 1024, %s32_s30, [#allocation6], %s1755_s25, %s1755_s25, %s1756_s26  }
  0x23   :  { %1748 = dma.done.wait [#allocation3], 512  }
  0x24   :  { %1749 = vsyncadd [#allocation3], 4294966784 }
  0x25   :  { %1750 = dma.done.wait [#allocation6], 1024  }
  0x26   :  { %1751 = vsyncadd [#allocation6], 4294966272  ;;  %v1758_v0 = vmov 0   ;;  %v46_v1 = vld [vmem:[%s1974_s0] sm:$0xff]  ;;  %v47_v2 = vld [vmem:[%s1974_s0 + $0x8] sm:$0xff]  ;;  %vm66_vm0 = vcmask 261120  }
  0x27   :  { %1681 = vset.pattern.permute.xlu0 %v1758_v0  ;;  %v62_v3 = vld [vmem:[#allocation2] sm:$0xff]  ;;  %v63_v4 = vld [vmem:[#allocation2 + $0x8] sm:$0xff]  ;;  %v64_v10 = vld [vmem:[#allocation2 + $0x10] sm:$0xff]  ;;  %vm616_vm3 = vcmask 523264   ;;  %s1760_s18 = smov [#allocation7]  }
  0x28   :  { %51 = vperm.xlu0 %1681, %v46_v1   ;;  %v74_v5 = vand.u32 4294901760, %v62_v3  ;;  %v77_v6 = vand.u32 4294901760, %v63_v4  ;;  %v65_v11 = vld [vmem:[#allocation2 + $0x18] sm:$0xff]  ;;  %v80_v12 = vand.u32 4294901760, %v64_v10  ;;  %v601_v35 = vld [vmem:[#allocation5] sm:$0xff]  ;;  %v602_v36 = vld [vmem:[#allocation5 + $0x8] sm:$0xff] }
  0x29   :  { %v83_v13 = vand.u32 4294901760, %v65_v11  ;;  %v603_v37 = vld [vmem:[#allocation5 + $0x10] sm:$0xff]  ;;  %v624_v38 = vand.u32 4294901760, %v601_v35  ;;  %v627_v39 = vand.u32 4294901760, %v602_v36  ;;  %v604_v40 = vld [vmem:[#allocation5 + $0x18] sm:$0xff]  ;;  %v605_v42 = vld [vmem:[#allocation5 + $0x20] sm:$0xff] }
  0x2a   :  { %v1822_v7 = vpack.c.bf16 %v77_v6, %v74_v5  ;;  %v164_v8 = vsub.f32 %v62_v3, %v74_v5  ;;  %v171_v9 = vsub.f32 %v63_v4, %v77_v6  ;;  %v178_v19 = vsub.f32 %v64_v10, %v80_v12  ;;  %v606_v43 = vld [vmem:[#allocation5 + $0x28] sm:$0xff]  ;;  %s1210_s19 = sshll.u32 %s1760_s18, 4  ;;  %s1211_s19 = int_to_ptr.vmem [resolvable:$true] %s1210_s19 }
  0x2b   :  { %v1826_v16 = vpack.c.bf16 %v83_v13, %v80_v12  ;;  %v185_v20 = vsub.f32 %v65_v11, %v83_v13  ;;  %v630_v41 = vand.u32 4294901760, %v603_v37  ;;  %v633_v44 = vand.u32 4294901760, %v604_v40  ;;  %s1726_s20 = scalar_lea.vmem %s1211_s19, 256  ;;  %p1731_p3 = scmp.lt.s32.totalorder %s1211_s19, %s1211_s19 }
  0x2c   :  { %54 = vperm.xlu0 %1681, %v47_v2   ;;  %1509 = vmatprep.subr.bf16.mxu0 %v1822_v7  ;;  %v165_v14 = vand.u32 4294901760, %v164_v8  ;;  %v172_v15 = vand.u32 4294901760, %v171_v9  ;;  %v179_v23 = vand.u32 4294901760, %v178_v19  ;;  %v1835_v31 = vpack.c.bf16 %v171_v9, %v164_v8  ;;  %p1727_p2 = scmp.ne.s32.totalorder %s1211_s19, %s1726_s20  ;;  %p1732_p4 = scmp.lt.s32.totalorder %s1726_s20, %s1726_s20 }
  0x2d   :  { %1511 = vmatpush3.bf16.msra.mxu0 %v1822_v7  ;;  %v186_v24 = vand.u32 4294901760, %v185_v20  ;;  %v1837_v32 = vpack.c.bf16 %v185_v20, %v178_v19  ;;  %v636_v45 = vand.u32 4294901760, %v605_v42  ;;  %v639_v46 = vand.u32 4294901760, %v606_v43 }
  0x2e   :  { %v166_v17 = vsub.f32 %v164_v8, %v165_v14  ;;  %v173_v18 = vsub.f32 %v171_v9, %v172_v15  ;;  %1513 = vmatprep.subr.bf16.mxu0 %v1826_v16  ;;  %v180_v26 = vsub.f32 %v178_v19, %v179_v23  ;;  %v1839_v33 = vpack.c.bf16 %v172_v15, %v165_v14  ;;  %p1733_p5 = por %p1732_p4, %p1731_p3 }
  0x2f   :  { %v187_v27 = vsub.f32 %v185_v20, %v186_v24  ;;  %v1841_v34 = vpack.c.bf16 %v186_v24, %v179_v23  ;;  %v1843_v47 = vpack.c.bf16 %v627_v39, %v624_v38  ;;  %v1845_v48 = vsub.f32 %v601_v35, %v624_v38 }
  0x30   :  { %v167_v21 = vand.u32 4294901760, %v166_v17  ;;  %v174_v22 = vand.u32 4294901760, %v173_v18  ;;  %v181_v28 = vand.u32 4294901760, %v180_v26  ;;  %v1847_v49 = vsub.f32 %v602_v36, %v627_v39  ;;  %p1734_p6 = pnand %p1733_p5, %p1727_p2 }
  0x31   :  { %1515 = vmatpush3.bf16.msra.mxu0 %v1826_v16  ;;  %v188_v29 = vand.u32 4294901760, %v187_v27  ;;  %v1849_v50 = vsub.f32 %v603_v37, %v630_v41  ;;  %v1851_v51 = vpack.c.bf16 %v633_v44, %v630_v41  ;;  %v1853_v52 = vsub.f32 %v604_v40, %v633_v44 }
  0x32   :  { %v1830_v25 = vpack.c.bf16 %v174_v22, %v167_v21  ;;  %v1855_v53 = vpack.c.bf16 %v639_v46, %v636_v45  ;;  %v1857_v54 = vsub.f32 %v605_v42, %v636_v45  ;;  %v719_v55 = vand.u32 4294901760, %v1845_v48 }
  0x33   :  { %v1833_v30 = vpack.c.bf16 %v188_v29, %v181_v28  ;;  %v726_v56 = vand.u32 4294901760, %v1847_v49  ;;  %v733_v57 = vand.u32 4294901760, %v1849_v50  ;;  %v1862_v58 = vsub.f32 %v606_v43, %v639_v46 }
  0x34   :  { %1517 = vmatprep.subr.bf16.mxu0 %v1830_v25  ;;  %v740_v59 = vand.u32 4294901760, %v1853_v52  ;;  %v747_v60 = vand.u32 4294901760, %v1857_v54  ;;  %v720_v61 = vsub.f32 %v1845_v48, %v719_v55  ;;  %v48_v14 = vlaneseq }
  0x35   :  { %v727_v62 = vsub.f32 %v1847_v49, %v726_v56  ;;  %v734_v63 = vsub.f32 %v1849_v50, %v733_v57  ;;  %v754_v0 = vand.u32 4294901760, %v1862_v58  ;;  %v1759_v18 = vmov 0.0  }
  0x36   :  { %v741_v1 = vsub.f32 %v1853_v52, %v740_v59  ;;  %v748_v2 = vsub.f32 %v1857_v54, %v747_v60  ;;  %v721_v3 = vand.u32 4294901760, %v720_v61  ;;  %v49_v15 = vand.u32 127, %v48_v14 }
  0x37   :  { %v728_v4 = vand.u32 4294901760, %v727_v62  ;;  %v735_v5 = vand.u32 4294901760, %v734_v63  ;;  %v755_v6 = vsub.f32 %v1862_v58, %v754_v0  ;;  %v1588_v43 = vpack.c.bf16 %v1847_v49, %v1845_v48 }
  0x38   :  { %v742_v8 = vand.u32 4294901760, %v741_v1  ;;  %v749_v10 = vand.u32 4294901760, %v748_v2  ;;  %v1628_v48 = vpack.c.bf16 %v754_v0, %v747_v60 }
  0x39   :  { %v1572_v9 = vpack.c.bf16 %v728_v4, %v721_v3  ;;  %v756_v11 = vand.u32 4294901760, %v755_v6 }
  0x3a   :  { %v1576_v12 = vpack.c.bf16 %v742_v8, %v735_v5  ;;  %v1592_v5 = vpack.c.bf16 %v1853_v52, %v1849_v50 }
  0x3b   :  { %1573 = vmatprep.subr.bf16.mxu1 %v1572_v9  ;;  %v1580_v13 = vpack.c.bf16 %v756_v11, %v749_v10  ;;  %v1596_v11 = vpack.c.bf16 %v1862_v58, %v1857_v54 }
  0x3c   :  { %1575 = vmatpush3.bf16.msra.mxu1 %v1572_v9 }
  0x3d   :  { %1577 = vmatprep.subr.bf16.mxu1 %v1576_v12 }
  0x40   :  { %1579 = vmatpush3.bf16.msra.mxu1 %v1576_v12 }
  0x41   :  { %1581 = vmatprep.subr.bf16.mxu1 %v1580_v13 }
  0x44   :  { %1583 = vmatpush3.bf16.msra.mxu1 %v1580_v13 }
  0xa7   :  { %v52_v17 = vpop.permute.xlu0 %51 }
  0xa8   :  { %vm56_vm1 = vcmp.eq.s32.totalorder %v49_v15, %v52_v17  ;;  %v1624_v17 = vpack.c.bf16 %v740_v59, %v733_v57 }
  0xa9   :  { %v1223_v19 = vsel %vm56_vm1, 1.0, %v1759_v18 }
  0xaa   :  { %v68_v20 = vsel %vm66_vm0, %v1223_v19, 0 }
  0xab   :  { %v55_v21 = vpop.permute.xlu0 %54  ;;  %v143_v22 = vsub.f32 %v68_v20, %v68_v20 }
  0xac   :  { %vm57_vm2 = vcmp.eq.s32.totalorder %v49_v15, %v55_v21  ;;  %v1620_v15 = vpack.c.bf16 %v726_v56, %v719_v55 }
  0xad   :  { %v1224_v23 = vsel %vm57_vm2, 1.0, %v1759_v18  ;;  %v144_v24 = vand.u32 4294901760, %v143_v22 }
  0xae   :  { %v71_v26 = vsel %vm66_vm0, %v1224_v23, 0 }
  0xaf   :  { %v153_v27 = vsub.f32 %v71_v26, %v71_v26  ;;  %v145_v28 = vsub.f32 %v143_v22, %v144_v24 }
  0xb1   :  { %v146_v29 = vand.u32 4294901760, %v145_v28  ;;  %v154_v35 = vand.u32 4294901760, %v153_v27 }
  0xb3   :  { %1336 = vmatprep.mubr.f32.mxu0 %v146_v29  ;;  %v155_v36 = vsub.f32 %v153_v27, %v154_v35 }
  0xb5   :  { %v156_v37 = vand.u32 4294901760, %v155_v36 }
  0xb7   :  { %1337 = vmatmul.mubr.f32.vlgmr.msra.gmra.mrb[0].mxu0 %v156_v37 }
  0xb8   :  { %1519 = vmatpush3.bf16.msra.mxu0 %v1830_v25  ;;  %1347 = vmatprep.mubr.msk.f32.mxu0 %vm66_vm0, %v1223_v19  ;;  %v608_v25 = vld [vmem:[#allocation5 + $0x38] sm:$0xff] }
  0xb9   :  { %1521 = vmatprep.subr.bf16.mxu0 %v1833_v30 }
  0xbc   :  { %1523 = vmatpush3.bf16.msra.mxu0 %v1833_v30 }
  0xbd   :  { %1525 = vmatprep.subr.bf16.mxu0 %v1835_v31 }
  0xbf   :  { %1348 = vmatmul.mubr.msk.f32.vlgmr.msra.gmra.mrb[0].mxu0 %vm66_vm0, %v1224_v23 }
  0xc0   :  { %1527 = vmatpush3.bf16.msra.mxu0 %v1835_v31  ;;  %1358 = vmatprep.mubr.f32.mxu0 %v143_v22  ;;  %v645_v31 = vand.u32 4294901760, %v608_v25 }
  0xc1   :  { %1529 = vmatprep.subr.bf16.mxu0 %v1837_v32 }
  0xc4   :  { %1531 = vmatpush3.bf16.msra.mxu0 %v1837_v32 }
  0xc5   :  { %1533 = vmatprep.subr.bf16.mxu0 %v1822_v7 }
  0xc7   :  { %1359 = vmatmul.mubr.f32.vlgmr.msra.gmra.mrb[0].mxu0 %v153_v27 }
  0xc8   :  { %1535 = vmatpush3.bf16.msra.mxu0 %v1822_v7  ;;  %1369 = vmatprep.mubr.f32.mxu0 %v144_v24 }
  0xc9   :  { %1537 = vmatprep.subr.bf16.mxu0 %v1826_v16 }
  0xcc   :  { %1539 = vmatpush3.bf16.msra.mxu0 %v1826_v16 }
  0xcd   :  { %1541 = vmatprep.subr.bf16.mxu0 %v1839_v33 }
  0xcf   :  { %1370 = vmatmul.mubr.f32.vlgmr.msra.gmra.mrb[0].mxu0 %v154_v35 }
  0xd0   :  { %1543 = vmatpush3.bf16.msra.mxu0 %v1839_v33  ;;  %1380 = vmatprep.mubr.msk.f32.mxu0 %vm66_vm0, %v1223_v19 }
  0xd1   :  { %1545 = vmatprep.subr.bf16.mxu0 %v1841_v34 }
  0xd4   :  { %1547 = vmatpush3.bf16.msra.mxu0 %v1841_v34 }
  0xd5   :  { %1549 = vmatprep.subr.bf16.mxu0 %v1822_v7 }
  0xd7   :  { %1381 = vmatmul.mubr.msk.f32.vlgmr.msra.gmra.mrb[0].mxu0 %vm66_vm0, %v1224_v23 }
  0xd8   :  { %1551 = vmatpush3.bf16.msra.mxu0 %v1822_v7  ;;  %1391 = vmatprep.mubr.msk.f32.mxu0 %vm66_vm0, %v1223_v19  ;;  %v607_v7 = vld [vmem:[#allocation5 + $0x30] sm:$0xff] }
  0xd9   :  { %1553 = vmatprep.subr.bf16.mxu0 %v1826_v16  ;;  %v642_v30 = vand.u32 4294901760, %v607_v7 }
  0xdb   :  { %v760_v32 = vsub.f32 %v607_v7, %v642_v30  ;;  %v1920_v44 = vpack.c.bf16 %v645_v31, %v642_v30 }
  0xdc   :  { %1555 = vmatpush3.bf16.msra.mxu0 %v1826_v16  ;;  %v767_v16 = vsub.f32 %v608_v25, %v645_v31 }
  0xdd   :  { %1557 = vmatprep.subr.bf16.mxu0 %v1843_v47  ;;  %v761_v33 = vand.u32 4294901760, %v760_v32 }
  0xde   :  { %v768_v34 = vand.u32 4294901760, %v767_v16  ;;  %v1600_v45 = vpack.c.bf16 %v767_v16, %v760_v32 }
  0xdf   :  { %1392 = vmatmul.mubr.msk.f32.vlgmr.msra.gmra.mrb[0].mxu0 %vm66_vm0, %v1224_v23  ;;  %v762_v38 = vsub.f32 %v760_v32, %v761_v33 }
  0xe0   :  { %1559 = vmatpush3.bf16.msra.mxu0 %v1843_v47  ;;  %v769_v39 = vsub.f32 %v767_v16, %v768_v34  ;;  %v1632_v46 = vpack.c.bf16 %v768_v34, %v761_v33 }
  0xe1   :  { %1561 = vmatprep.subr.bf16.mxu0 %v1851_v51  ;;  %v763_v40 = vand.u32 4294901760, %v762_v38 }
  0xe2   :  { %v770_v41 = vand.u32 4294901760, %v769_v39 }
  0xe4   :  { %1563 = vmatpush3.bf16.msra.mxu0 %v1851_v51  ;;  %v1584_v42 = vpack.c.bf16 %v770_v41, %v763_v40 }
  0xe5   :  { %1565 = vmatprep.subr.bf16.mxu0 %v1855_v53 }
  0xe6   :  { %1585 = vmatprep.subr.bf16.mxu1 %v1584_v42 }
  0xe7   :  { %1587 = vmatpush3.bf16.msra.mxu1 %v1584_v42 }
  0xe8   :  { %1567 = vmatpush3.bf16.msra.mxu0 %v1855_v53  ;;  %1589 = vmatprep.subr.bf16.mxu1 %v1588_v43 }
  0xe9   :  { %1569 = vmatprep.subr.bf16.mxu0 %v1920_v44 }
  0xec   :  { %1571 = vmatpush3.bf16.msra.mxu0 %v1920_v44 }
 0x1b2   :  { %v1393_v61 = vpop.f32.mrb[0].mxu0 }
 0x1b3   :  { %v621_v62 = vsel %vm616_vm3, %v1393_v61, 0  ;;  %v591_v63 = vpop.f32.mrb[1].mxu0 }
 0x1b4   :  { %v706_v1 = vand.u32 4294901760, %v621_v62  ;;  %v618_v2 = vsel %vm616_vm3, %v591_v63, 0 }
 0x1b5   :  { %v696_v3 = vand.u32 4294901760, %v618_v2 }
 0x1b6   :  { %v707_v4 = vsub.f32 %v621_v62, %v706_v1 }
 0x1b7   :  { %v697_v6 = vsub.f32 %v618_v2, %v696_v3  ;;  %1429 = vmatprep.mubr.f32.mxu1 %v696_v3 }
 0x1b8   :  { %v708_v8 = vand.u32 4294901760, %v707_v4  ;;  %1430 = vmatmul.mubr.f32.vlgmr.msra.gmra.mrb[0].mxu1 %v706_v1 }
 0x1b9   :  { %v698_v9 = vand.u32 4294901760, %v697_v6  ;;  %1591 = vmatpush3.bf16.msra.mxu1 %v1588_v43  ;;  %1448 = vmatprep.mubr.f32.mxu1 %v697_v6 }
 0x1ba   :  { %v709_v10 = vsub.f32 %v707_v4, %v708_v8  ;;  %1593 = vmatprep.subr.bf16.mxu1 %v1592_v5 }
 0x1bb   :  { %v699_v12 = vsub.f32 %v697_v6, %v698_v9 }
 0x1bc   :  { %v710_v14 = vand.u32 4294901760, %v709_v10 }
 0x1bd   :  { %1595 = vmatpush3.bf16.msra.mxu1 %v1592_v5  ;;  %v700_v13 = vand.u32 4294901760, %v699_v12 }
 0x1be   :  { %1597 = vmatprep.subr.bf16.mxu1 %v1596_v11 }
 0x1bf   :  { %1410 = vmatprep.mubr.f32.mxu0 %v700_v13 }
 0x1c0   :  { %1411 = vmatmul.mubr.f32.vlgmr.msra.gmra.mrb[2].mxu0 %v710_v14 }
 0x1c1   :  { %1599 = vmatpush3.bf16.msra.mxu1 %v1596_v11 }
 0x1c2   :  { %1601 = vmatprep.subr.bf16.mxu1 %v1600_v45 }
 0x1c5   :  { %1603 = vmatpush3.bf16.msra.mxu1 %v1600_v45 }
 0x1c6   :  { %1605 = vmatprep.subr.bf16.mxu1 %v1843_v47 }
 0x1c8   :  { %1449 = vmatmul.mubr.f32.vlgmr.msra.gmra.mrb[0].mxu1 %v707_v4 }
 0x1c9   :  { %1607 = vmatpush3.bf16.msra.mxu1 %v1843_v47  ;;  %1467 = vmatprep.mubr.f32.mxu1 %v698_v9 }
 0x1ca   :  { %1609 = vmatprep.subr.bf16.mxu1 %v1851_v51 }
 0x1cd   :  { %1611 = vmatpush3.bf16.msra.mxu1 %v1851_v51 }
 0x1ce   :  { %1613 = vmatprep.subr.bf16.mxu1 %v1855_v53 }
 0x1d1   :  { %1615 = vmatpush3.bf16.msra.mxu1 %v1855_v53 }
 0x1d2   :  { %1617 = vmatprep.subr.bf16.mxu1 %v1920_v44 }
 0x1d5   :  { %1619 = vmatpush3.bf16.msra.mxu1 %v1920_v44 }
 0x1d6   :  { %1621 = vmatprep.subr.bf16.mxu1 %v1620_v15 }
 0x1d8   :  { %1468 = vmatmul.mubr.f32.vlgmr.msra.gmra.mrb[0].mxu1 %v708_v8 }
 0x1d9   :  { %1623 = vmatpush3.bf16.msra.mxu1 %v1620_v15  ;;  %1486 = vmatprep.mubr.f32.mxu1 %v696_v3 }
 0x1da   :  { %1625 = vmatprep.subr.bf16.mxu1 %v1624_v17 }
 0x1dd   :  { %1627 = vmatpush3.bf16.msra.mxu1 %v1624_v17 }
 0x1de   :  { %1629 = vmatprep.subr.bf16.mxu1 %v1628_v48 }
 0x1e1   :  { %1631 = vmatpush3.bf16.msra.mxu1 %v1628_v48 }
 0x1e2   :  { %1633 = vmatprep.subr.bf16.mxu1 %v1632_v46 }
 0x1e5   :  { %1635 = vmatpush3.bf16.msra.mxu1 %v1632_v46 }
 0x1e6   :  { %1637 = vmatprep.subr.bf16.mxu1 %v1843_v47 }
 0x1e8   :  { %1487 = vmatmul.mubr.f32.vlgmr.msra.gmra.mrb[0].mxu1 %v706_v1 }
 0x1e9   :  { %1639 = vmatpush3.bf16.msra.mxu1 %v1843_v47  ;;  %1505 = vmatprep.mubr.f32.mxu1 %v696_v3  ;;  %v1231_v47 = vld [vmem:[%s1977_s3] ss:$0 sm:$0xff] }
 0x1ea   :  { %1641 = vmatprep.subr.bf16.mxu1 %v1851_v51 }
 0x1ed   :  { %1643 = vmatpush3.bf16.msra.mxu1 %v1851_v51 }
 0x1ee   :  { %1645 = vmatprep.subr.bf16.mxu1 %v1855_v53 }
 0x1f1   :  { %1647 = vmatpush3.bf16.msra.mxu1 %v1855_v53 }
 0x1f2   :  { %1649 = vmatprep.subr.bf16.mxu1 %v1920_v44 }
 0x1f5   :  { %1651 = vmatpush3.bf16.msra.mxu1 %v1920_v44 }
 0x1f8   :  { %1506 = vmatmul.mubr.f32.vlgmr.msra.gmra.mrb[0].mxu1 %v706_v1 }
 0x293   :  { %v1412_v49 = vpop.f32.mrb[2].mxu0 }
 0x294   :  { %v702_v50 = vpop.f32.mrb[3].mxu0  ;;  %v713_v52 = vadd.f32 %v1412_v49, %v1231_v47 }
 0x295   :  { %v703_v54 = vadd.f32 %v1231_v47, %v702_v50 }
 0x2cb   :  { %v1507_v51 = vpop.f32.mrb[0].mxu1 }
 0x2cc   :  { %v1653_v55 = vadd.f32 %v1507_v51, %v713_v52  ;;  %v1193_v56 = vpop.f32.mrb[1].mxu1 }
 0x2cd   :  { %v1655_v57 = vadd.f32 %v1193_v56, %v703_v54 }
 0x2ce   :  { %1204 = vst [vmem:[#allocation7 + $0x8] sm:$0xff] %v1653_v55 }
 0x2cf   :  { %1203 = vst [vmem:[#allocation7] sm:$0xff] %v1655_v57 }
 0x2d0   :  { %1737 = shalt.err (!%p1734_p6)
}
 0x2d1   :  { %s1738_s22 = scalar_lea.hbm %s1978_s4, 256 }
 0x2d2   :  { %p1739_p7 = scmp.ne.s32.totalorder %s1978_s4, %s1738_s22  ;;  %p1742_p8 = scmp.lt.u32.totalorder %s1738_s22, %s1978_s4 }
 0x2d4   :  { %p1744_p9 = pnand %p1742_p8, %p1739_p7 }
 0x2d6   :  { %1747 = shalt.err (!%p1744_p9)
}
 0x2d7   :  { %1216 = dma.vmem_to_hbm [thread:$0]  %s1211_s19, 256, %s1978_s4, [#allocation4], %s1755_s25, %s1755_s25, %s1756_s26  }
 0x2d8   :  { %1752 = dma.done.wait [#allocation4], 256  }
 0x2d9   :  { %1753 = vsyncadd [#allocation4], 4294967040 }
 0x2da   :  { %1220 = vsyncpa [#allocation3], 1 }
 0x2db   :  { %1221 = vsyncpa [#allocation6], 1 }
 0x2dc   :  { %1222 = vsyncpa [#allocation4], 1 }

</bundles_post_ra>
